<compile_context>
chip_gen: v7x
topology: tpu7x:2x2x1
jax: 0.10.0
libtpu: 0.0.40
codegen_flags: <defaults>
</compile_context>

<pallas_src>
import math
import numpy as np

import jax
import jax.numpy as jnp
from jax.experimental import pallas as pl
from jax.experimental.pallas import tpu as pltpu


def _pos_emb_kernel(x_ref, table_ref, out_ref):
    # x_ref:     (TB, K_pad)     f32 -- cols [0:pack] = timesteps, col `pack` = 1.0
    # table_ref: (K_pad, W_pad)  f32 -- rows [0:pack] = freq expansion, row `pack` = phase
    # out_ref:   (TB, W_pad)     out_dtype
    emb = jnp.dot(x_ref[...], table_ref[...],
                  preferred_element_type=jnp.float32)        # MXU (idle otherwise)
    out_ref[...] = jnp.sin(emb).astype(out_ref.dtype)        # VPU polynomial (binding unit)


def _tpu_tuning():
    """Return (per-step x+out VMEM budget in bytes, split grid across TCs?)."""
    kind = ""
    try:
        kind = jax.devices()[0].device_kind.lower()
    except Exception:
        pass
    if "v7" in kind:
        return 12 * 1024 * 1024, True    # double-buffered ~24 MiB < 32 MiB scoped default
    if "v6" in kind:
        return 8 * 1024 * 1024, False    # ~16 MiB live
    return 4 * 1024 * 1024, False        # v5e / unknown: ~8 MiB live < 16 MiB scoped


def _round_up(a, m):
    return -(-a // m) * m


def sinusoidal_pos_emb(x, dim, out_dtype=jnp.float32):
    """x: (B,) timesteps -> (B, dim) [sin | cos] embedding (matches torch module)."""
    assert dim % 2 == 0 and dim >= 4, "dim must be even and >= 4 (half_dim - 1 > 0)"
    x = x.astype(jnp.float32).reshape(-1)
    B = int(x.shape[0])
    half_dim = dim // 2

    # Lane packing: put 128 // dim batch rows on one 128-lane output row when
    # possible; otherwise pad the output width to a multiple of 128 so every
    # store is an unmasked, lane-dense vst.
    pack = 128 // dim if (dim < 128 and 128 % dim == 0) else 1
    width = pack * dim
    width_pad = _round_up(width, 128)

    # K = `pack` timestep columns + 1 ones-column (folds the phase add into the
    # matmul); pad K to a multiple of 8 with zero columns / zero table rows.
    K_pad = _round_up(pack + 1, 8)

    # --- constant table (host-side numpy, built once per (dim, pack)) --------
    scale = math.log(10000.0) / (half_dim - 1)
    freq = np.exp(np.arange(half_dim, dtype=np.float32) * -scale)
    freq_row = np.concatenate([freq, freq])                               # (dim,)
    phase_row = np.concatenate([np.zeros(half_dim, np.float32),
                                np.full(half_dim, np.pi / 2, np.float32)])  # (dim,)
    table_np = np.zeros((K_pad, width_pad), np.float32)
    for p in range(pack):
        table_np[p, p * dim:(p + 1) * dim] = freq_row
    table_np[pack, :width] = np.tile(phase_row, pack)
    table = jnp.asarray(table_np)

    # --- row tiling -----------------------------------------------------------
    R = -(-B // pack)                              # packed output rows
    out_row_bytes = width_pad * np.dtype(out_dtype).itemsize
    x_row_bytes = 128 * 4                          # (tb, K_pad) f32 block lane-pads to 128
    budget, split_cores = _tpu_tuning()
    tb_budget = max(8, (budget // (out_row_bytes + x_row_bytes)) // 8 * 8)
    tb = min(tb_budget, _round_up(R, 8))
    if split_cores and R >= 16 and tb >= R:
        # Guarantee >= 2 grid steps so both v7x TensorCores get work.
        tb = max(8, _round_up(-(-R // 2), 8))
    r_pad = _round_up(R, tb)
    grid = r_pad // tb
    b_pad = r_pad * pack

    # --- inputs ---------------------------------------------------------------
    x_packed = jnp.pad(x, (0, b_pad - B)).reshape(r_pad, pack)
    x_aug = jnp.concatenate(
        [x_packed,
         jnp.ones((r_pad, 1), jnp.float32),
         jnp.zeros((r_pad, K_pad - pack - 1), jnp.float32)], axis=-1)

    out_padded = pl.pallas_call(
        _pos_emb_kernel,
        out_shape=jax.ShapeDtypeStruct((r_pad, width_pad), out_dtype),
        grid_spec=pl.GridSpec(
            grid=(grid,),
            in_specs=[
                pl.BlockSpec((tb, K_pad), lambda i: (i, 0)),
                pl.BlockSpec((K_pad, width_pad), lambda i: (0, 0)),  # constant block: fetched once
            ],
            out_specs=pl.BlockSpec((tb, width_pad), lambda i: (i, 0)),
        ),
        compiler_params=pltpu.CompilerParams(
            dimension_semantics=("parallel",)),
    )(x_aug, table)

    if pack > 1:
        # width == width_pad == 128: free row-major reshape undoes lane packing.
        return out_padded.reshape(b_pad, dim)[:B]
    return out_padded[:B, :dim]


def _reference(x, dim):
    half_dim = dim // 2
    emb = math.log(10000.0) / (half_dim - 1)
    emb = jnp.exp(jnp.arange(half_dim, dtype=jnp.float32) * -emb)
    emb = x.astype(jnp.float32)[:, None] * emb[None, :]
    return jnp.concatenate([jnp.sin(emb), jnp.cos(emb)], axis=-1)


if __name__ == "__main__":
    k0, k1, k2 = jax.random.split(jax.random.PRNGKey(0), 3)

    # Main case: B=8, dim=32 (diffusion-style timesteps); pack=4 lane packing.
    B, dim = 8, 32
    x = jax.random.uniform(k0, (B,), dtype=jnp.float32) * 100.0
    out = sinusoidal_pos_emb(x, dim)
    jax.block_until_ready(out)
    assert out.shape == (B, dim)
    assert jnp.allclose(out, _reference(x, dim), atol=1e-4, rtol=1e-4)

    # B not a multiple of the lane pack (exercises batch padding); pack=8.
    B2, dim2 = 5, 16
    x2 = jax.random.uniform(k1, (B2,), dtype=jnp.float32) * 100.0
    out2 = sinusoidal_pos_emb(x2, dim2)
    jax.block_until_ready(out2)
    assert out2.shape == (B2, dim2)
    assert jnp.allclose(out2, _reference(x2, dim2), atol=1e-4, rtol=1e-4)

    # dim that does not divide 128 (exercises the lane-padded output path); pack=1.
    B3, dim3 = 4, 96
    x3 = jax.random.uniform(k2, (B3,), dtype=jnp.float32) * 100.0
    out3 = sinusoidal_pos_emb(x3, dim3)
    jax.block_until_ready(out3)
    assert out3.shape == (B3, dim3)
    assert jnp.allclose(out3, _reference(x3, dim3), atol=1e-4, rtol=1e-4)

    print("KERNEL_OK")
</pallas_src>

<mosaic_0001>
module attributes {stable_mosaic.version = 11 : i64} {
  func.func @_pos_emb_kernel(%arg0: i32, %arg1: memref<8x8xf32, #tpu.memory_space<vmem>>, %arg2: memref<8x128xf32, #tpu.memory_space<vmem>>, %arg3: memref<8x128xf32, #tpu.memory_space<vmem>>) attributes {dimension_semantics = [#tpu.dimension_semantics<parallel>], iteration_bounds = array<i64: 1>, scalar_prefetch = 0 : i64, scratch_operands = 0 : i64, tpu.core_type = #tpu.core_type<tc>, window_params = [{transform_indices = @transform_0, window_bounds = array<i64: 8, 8>}, {pipeline_mode = #tpu.pipeline_mode<synchronous>, transform_indices = @transform_1, window_bounds = array<i64: 8, 128>}, {transform_indices = @transform_2, window_bounds = array<i64: 8, 128>}]} {
    %c0 = arith.constant 0 : index
    %c0_0 = arith.constant 0 : index
    %0 = vector.load %arg1[%c0, %c0_0] : memref<8x8xf32, #tpu.memory_space<vmem>>, vector<8x8xf32>
    %c0_1 = arith.constant 0 : index
    %c0_2 = arith.constant 0 : index
    %1 = vector.load %arg2[%c0_1, %c0_2] : memref<8x128xf32, #tpu.memory_space<vmem>>, vector<8x128xf32>
    %cst = arith.constant dense<0.000000e+00> : vector<8x128xf32>
    %2 = tpu.matmul %0, %1, %cst {dimension_numbers = #tpu.dot_dimension_numbers<[1], [0], [0], [1], [0, 0, 1, 1], [], []>} : vector<8x8xf32>, vector<8x128xf32>, vector<8x128xf32> -> vector<8x128xf32>
    %3 = math.sin %2 : vector<8x128xf32>
    %c0_3 = arith.constant 0 : index
    %c0_4 = arith.constant 0 : index
    %4 = vector.load %arg3[%c0_3, %c0_4] : memref<8x128xf32, #tpu.memory_space<vmem>>, vector<8x128xf32>
    tpu.vector_store %arg3[%c0_3, %c0_4], %3 {strides = array<i32>} : memref<8x128xf32, #tpu.memory_space<vmem>>, vector<8x128xf32>,
    return
  }
  func.func @transform_0(%arg0: i32) -> (i32, i32) {
    %c0_i32 = arith.constant 0 : i32
    %c0_i32_0 = arith.constant 0 : i32
    return %arg0, %c0_i32 : i32, i32
  }
  func.func @transform_1(%arg0: i32) -> (i32, i32) {
    %c0_i32 = arith.constant 0 : i32
    %c0_i32_0 = arith.constant 0 : i32
    %c0_i32_1 = arith.constant 0 : i32
    return %c0_i32, %c0_i32_0 : i32, i32
  }
  func.func @transform_2(%arg0: i32) -> (i32, i32) {
    %c0_i32 = arith.constant 0 : i32
    %c0_i32_0 = arith.constant 0 : i32
    return %arg0, %c0_i32 : i32, i32
  }
}

</mosaic_0001>

<bundles_post_ra>
// kernel: tpu_custom_call.1
= control target key start
LH: loop header
LB: loop body
LE: loop exit
PB: predicated region body
PF: predicated region fallthrough
CT: control target
= control target key end

     0   :  { %7 = vsyncpa [#allocation3], 0  ;;  %s419_s0 = inlined_call_operand.hbm [shape: f32[8,8], index: 0, kind: input, shape index: {}]   ;;  %s420_s1 = inlined_call_operand.hbm [shape: f32[8,128], index: 1, kind: input, shape index: {}]   ;;  %s421_s2 = inlined_call_operand.hbm [shape: f32[8,128], index: 2, kind: output, shape index: {}]  }
   0x1   :  { %8 = vsyncpa [#allocation6], 0 }
   0x2   :  { %9 = vsyncpa [#allocation4], 0  ;;  %s336_s9 = smov [#allocation2]   ;;  %s337_s11 = smov [#allocation5]  }
   0x3   :  { %s16_s10 = sshll.u32 %s336_s9, 4  ;;  %s26_s12 = sshll.u32 %s337_s11, 4  ;;  %s17_s10 = int_to_ptr.vmem [resolvable:$true] %s16_s10  ;;  %s27_s12 = int_to_ptr.vmem [resolvable:$true] %s26_s12 }
   0x4   :  { %s264_s15 = scalar_lea.hbm %s419_s0, 128 }
   0x5   :  { %p265_p0 = scmp.ne.s32.totalorder %s419_s0, %s264_s15  ;;  %p268_p1 = scmp.lt.u32.totalorder %s264_s15, %s419_s0 }
   0x7   :  { %p270_p2 = pnand %p268_p1, %p265_p0 }
   0x9   :  { %273 = shalt.err (!%p270_p2)
}
   0xa   :  { %s274_s20 = scalar_lea.vmem %s17_s10, 128  ;;  %p279_p4 = scmp.lt.s32.totalorder %s17_s10, %s17_s10 }
   0xb   :  { %p275_p3 = scmp.ne.s32.totalorder %s17_s10, %s274_s20  ;;  %p280_p5 = scmp.lt.s32.totalorder %s274_s20, %s274_s20 }
   0xd   :  { %p281_p6 = por %p280_p5, %p279_p4 }
   0xf   :  { %p282_p7 = pnand %p281_p6, %p275_p3 }
  0x11   :  { %285 = shalt.err (!%p282_p7)
}
  0x12   :  { %19 = dma.hbm_to_vmem [thread:$0]  %s419_s0, 128, %s17_s10, [#allocation3]  }
  0x13   :  { %s286_s25 = scalar_lea.hbm %s420_s1, 128 }
  0x14   :  { %p287_p8 = scmp.ne.s32.totalorder %s420_s1, %s286_s25  ;;  %p290_p9 = scmp.lt.u32.totalorder %s286_s25, %s420_s1 }
  0x16   :  { %p292_p10 = pnand %p290_p9, %p287_p8 }
  0x18   :  { %295 = shalt.err (!%p292_p10)
}
  0x19   :  { %s296_s30 = scalar_lea.vmem %s27_s12, 128  ;;  %p301_p12 = scmp.lt.s32.totalorder %s27_s12, %s27_s12 }
  0x1a   :  { %p297_p11 = scmp.ne.s32.totalorder %s27_s12, %s296_s30  ;;  %p302_p13 = scmp.lt.s32.totalorder %s296_s30, %s296_s30 }
  0x1c   :  { %p303_p0 = por %p302_p13, %p301_p12 }
  0x1e   :  { %p304_p1 = pnand %p303_p0, %p297_p11 }
  0x20   :  { %307 = shalt.err (!%p304_p1)
}
  0x21   :  { %29 = dma.hbm_to_vmem [thread:$0]  %s420_s1, 128, %s27_s12, [#allocation6]  }
  0x22   :  { %330 = dma.done.wait [#allocation3], 128  }
  0x23   :  { %331 = vsyncadd [#allocation3], 4294967168 }
  0x24   :  { %332 = dma.done.wait [#allocation6], 128  }
  0x25   :  { %333 = vsyncadd [#allocation6], 4294967168  ;;  %v338_v0 = vmov 0.0   ;;  %vm339_vm0 = vmmov 0   ;;  %vm38_vm1 = vcmask 64512   ;;  %v37_v1 = vld [vmem:[#allocation5] sm:$0xff] }
  0x26   :  { %240 = vmatprep.subr.mxu0 %v338_v0  ;;  %242 = vmatprep.mubr.msk.f32.mxu0 %vm339_vm0, %v338_v0  ;;  %v36_v2 = vld [vmem:[#allocation2] sm:$0xff]  ;;  %v340_v15 = vmov 683565275   ;;  %v341_v17 = vmov 2475754826   ;;  %s346_s1 = smov [#allocation7]  }
  0x27   :  { %241 = vmatpush3.msra.mxu0 %v37_v1  ;;  %v342_v20 = vmov 2131351028   ;;  %v343_v23 = vmov 2102212464   ;;  %v344_v26 = vmov 920167782  }
  0x28   :  { %243 = vmatmul.mubr.msk.f32.vlgmr.msra.gmra.mrb[0].mxu0 %vm38_vm1, %v36_v2  ;;  %v345_v29 = vmov 1326507024   ;;  %s223_s4 = sshll.u32 %s346_s1, 4  ;;  %s224_s4 = int_to_ptr.vmem [resolvable:$true] %s223_s4 }
  0x29   :  { %s308_s5 = scalar_lea.vmem %s224_s4, 128  ;;  %p313_p3 = scmp.lt.s32.totalorder %s224_s4, %s224_s4 }
  0x2a   :  { %p309_p2 = scmp.ne.s32.totalorder %s224_s4, %s308_s5  ;;  %p314_p4 = scmp.lt.s32.totalorder %s308_s5, %s308_s5 }
  0x2c   :  { %p315_p5 = por %p314_p4, %p313_p3 }
  0x2e   :  { %p316_p6 = pnand %p315_p5, %p309_p2 }
  0xfb   :  { %v386_v3 = vpop.f32.mrb[0].mxu0 }
  0xfc   :  { %v115_v4 = vand.u32 2139095040, %v386_v3  ;;  %v244_v5 = vpop.f32.mrb[1].mxu0  ;;  %v112_v9 = vand.u32 2147483647, %v386_v3  ;;  %vm114_vm9 = vcmp.lt.s32.totalorder %v386_v3, 0  ;;  %vm204_vm14 = vweird.f32 %v386_v3 }
  0xfe   :  { %v116_v6 = vshrl.u32 %v115_v4, 23  ;;  %v119_v12 = vand.u32 8388607, %v112_v9  ;;  %vm113_vm10 = vcmp.le.f32.partialorder %v112_v9, 0.7853982 }
 0x100   :  { %v234_v7 = vadd.s32 4294967169, %v116_v6  ;;  %v120_v31 = vor.u32 8388608, %v119_v12 }
 0x102   :  { %v122_v8 = vadd.s32 1, %v234_v7  ;;  %v160_v45 = vshll.u32 %v120_v31, 8 }
 0x104   :  { %vm123_vm2 = vcmp.gt.s32.totalorder %v122_v8, 0 }
 0x105   :  { %v124_v10 = vsel %vm123_vm2, %v122_v8, 0 }
 0x106   :  { %v126_v11 = vand.u32 31, %v124_v10  ;;  %v125_v14 = vshrl.u32 %v124_v10, 5 }
 0x108   :  { %v127_v13 = vsub.s32 32, %v126_v11  ;;  %v129_v16 = vshll.u32 %v340_v15, %v126_v11  ;;  %v132_v18 = vshll.u32 %v341_v17, %v126_v11  ;;  %v135_v22 = vshll.u32 %v342_v20, %v126_v11 }
 0x109   :  { %v138_v25 = vshll.u32 %v343_v23, %v126_v11  ;;  %v141_v28 = vshll.u32 %v344_v26, %v126_v11  ;;  %vm144_vm3 = vcmp.lt.s32.totalorder %v125_v14, 1  ;;  %vm147_vm4 = vcmp.lt.s32.totalorder %v125_v14, 4 }
 0x10a   :  { %v130_v19 = vshrl.u32 %v341_v17, %v127_v13  ;;  %v133_v21 = vshrl.u32 %v342_v20, %v127_v13  ;;  %v136_v24 = vshrl.u32 %v343_v23, %v127_v13  ;;  %v139_v27 = vshrl.u32 %v344_v26, %v127_v13 }
 0x10b   :  { %v142_v30 = vshrl.u32 %v345_v29, %v127_v13  ;;  %v128_v40 = vshrl.u32 %v340_v15, %v127_v13  ;;  %vm146_vm5 = vcmp.lt.s32.totalorder %v125_v14, 3  ;;  %vm145_vm6 = vcmp.lt.s32.totalorder %v125_v14, 2 }
 0x10c   :  { %v131_v32 = vor.u32 %v130_v19, %v129_v16  ;;  %v134_v33 = vor.u32 %v133_v21, %v132_v18  ;;  %v137_v34 = vor.u32 %v136_v24, %v135_v22  ;;  %v140_v35 = vor.u32 %v139_v27, %v138_v25 }
 0x10d   :  { %v143_v36 = vor.u32 %v142_v30, %v141_v28 }
 0x10e   :  { %v149_v37 = vsel %vm147_vm4, %v137_v34, 2102212464  ;;  %v152_v38 = vsel %vm144_vm3, %v131_v32, %v134_v33  ;;  %v156_v39 = vsel %vm144_vm3, %v134_v33, %v137_v34  ;;  %v153_v41 = vsel %vm147_vm4, %v140_v35, 920167782 }
 0x10f   :  { %v157_v42 = vsel %vm147_vm4, %v143_v36, 1326507024  ;;  %v154_v43 = vsel %vm146_vm5, %v137_v34, %v153_v41  ;;  %v148_v46 = vsel %vm144_vm3, %v128_v40, %v131_v32  ;;  %v150_v47 = vsel %vm146_vm5, %v134_v33, %v149_v37 }
 0x110   :  { %v158_v44 = vsel %vm146_vm5, %v140_v35, %v157_v42  ;;  %v155_v48 = vsel %vm145_vm6, %v152_v38, %v154_v43  ;;  %v151_v54 = vsel %vm145_vm6, %v148_v46, %v150_v47 }
 0x111   :  { %v159_v49 = vsel %vm145_vm6, %v156_v39, %v158_v44  ;;  %v395_v52 = vmul.u32.u64.low %v160_v45, %v155_v48  ;;  %v396_v53 = vmul.u32.u64.high %v160_v45, %v155_v48, %v395_v52  ;;  %v167_v56 = vmul.u32 %v160_v45, %v151_v54 }
 0x112   :  { %v392_v50 = vmul.u32.u64.low %v160_v45, %v159_v49  ;;  %v393_v51 = vmul.u32.u64.high %v160_v45, %v159_v49, %v392_v50 }
 0x113   :  { %v170_v55 = vadd.s32 1, %v396_v53 }
 0x114   :  { %vm169_vm7 = vc.u32 %v393_v51, %v395_v52  ;;  %v168_v5 = vadd.s32 %v395_v52, %v393_v51 }
 0x115   :  { %v171_v57 = vsel %vm169_vm7, %v170_v55, %v396_v53 }
 0x116   :  { %v172_v58 = vadd.s32 %v171_v57, %v167_v56 }
 0x118   :  { %v173_v59 = vadd.s32 536870912, %v172_v58 }
 0x11a   :  { %v174_v60 = vshrl.u32 %v173_v59, 30 }
 0x11c   :  { %v175_v61 = vshll.u32 %v174_v60, 30  ;;  %v198_v18 = vsub.s32 4, %v174_v60 }
 0x11e   :  { %v176_v62 = vsub.s32 %v172_v58, %v175_v61  ;;  %v199_v21 = vsel %vm114_vm9, %v198_v18, %v174_v60 }
 0x11f   :  { %v201_v23 = vsel %vm113_vm10, 0, %v199_v21 }
 0x120   :  { %v178_v63 = vsub.s32 0, %v176_v62  ;;  %v205_v24 = vadd.s32 3, %v201_v23 }
 0x122   :  { %v235_v0 = vmin.u32 %v178_v63, %v176_v62  ;;  %v206_v25 = vand.u32 3, %v205_v24 }
 0x124   :  { %v180_v1 = vclz %v235_v0  ;;  %vm211_vm11 = vcmp.eq.s32.totalorder %v206_v25, 2  ;;  %vm208_vm12 = vcmp.eq.s32.totalorder %v206_v25, 0  ;;  %vm207_vm13 = vcmp.lt.s32.totalorder %v206_v25, 2 }
 0x126   :  { %v236_v2 = vadd.s32 4294967294, %v180_v1 }
 0x128   :  { %vm237_vm8 = vcmp.lt.s32.totalorder %v236_v2, 0 }
 0x129   :  { %v183_v4 = vsel %vm237_vm8, 0, %v236_v2 }
 0x12a   :  { %v184_v6 = vsub.s32 32, %v183_v4  ;;  %v188_v7 = vsub.s32 4294967266, %v183_v4  ;;  %v185_v8 = vshll.u32 %v176_v62, %v183_v4 }
 0x12c   :  { %v186_v10 = vshrl.u32 %v168_v5, %v184_v6  ;;  %v189_v11 = vadd.s32 127, %v188_v7 }
 0x12e   :  { %v187_v12 = vor.u32 %v186_v10, %v185_v8  ;;  %v190_v13 = vshll.u32 %v189_v11, 23 }
 0x130   :  { %v191_v14 = vor.u32 4788187, %v190_v13  ;;  %v194_v16 = vcvt.s32.f32 %v187_v12 }
 0x132   :  { %v192_v15 = vand.u32 2147483647, %v191_v14 }
 0x134   :  { %v195_v17 = vmul.f32 %v194_v16, %v192_v15 }
 0x136   :  { %v196_v19 = vxor.u32 2147483648, %v195_v17 }
 0x138   :  { %v197_v20 = vsel %vm114_vm9, %v196_v19, %v195_v17 }
 0x139   :  { %v200_v22 = vsel %vm113_vm10, %v386_v3, %v197_v20 }
 0x13a   :  { %260 = vcosq.f32 %v200_v22 }
 0x13b   :  { %262 = vsinq.f32 %v200_v22 }
 0x144   :  { %v261_v26 = vpop.eup %260 }
 0x145   :  { %v263_v27 = vpop.eup %262  ;;  %v212_v28 = vxor.u32 2147483648, %v261_v26 }
 0x146   :  { %v209_v29 = vxor.u32 2147483648, %v263_v27 }
 0x147   :  { %v213_v30 = vsel %vm211_vm11, %v212_v28, %v263_v27 }
 0x148   :  { %v210_v9 = vsel %vm208_vm12, %v261_v26, %v209_v29 }
 0x149   :  { %v214_v31 = vsel %vm207_vm13, %v210_v9, %v213_v30 }
 0x14a   :  { %v215_v32 = vsel %vm204_vm14, nan, %v214_v31 }
 0x14b   :  { %216 = vst [vmem:[#allocation7] sm:$0xff] %v215_v32 }
 0x14c   :  { %319 = shalt.err (!%p316_p6)
}
 0x14d   :  { %s320_s8 = scalar_lea.hbm %s421_s2, 128 }
 0x14e   :  { %p321_p7 = scmp.ne.s32.totalorder %s421_s2, %s320_s8  ;;  %p324_p8 = scmp.lt.u32.totalorder %s320_s8, %s421_s2 }
 0x150   :  { %p326_p9 = pnand %p324_p8, %p321_p7 }
 0x152   :  { %329 = shalt.err (!%p326_p9)
}
 0x153   :  { %226 = dma.vmem_to_hbm [thread:$0]  %s224_s4, 128, %s421_s2, [#allocation4]  }
 0x154   :  { %334 = dma.done.wait [#allocation4], 128  }
 0x155   :  { %335 = vsyncadd [#allocation4], 4294967168 }
 0x156   :  { %230 = vsyncpa [#allocation3], 1 }
 0x157   :  { %231 = vsyncpa [#allocation6], 1 }
 0x158   :  { %232 = vsyncpa [#allocation4], 1 }

</bundles_post_ra>
